<compile_context>
chip_gen: v6e
topology: v6e:2x2x1
jax: 0.10.0
libtpu: 0.0.40
codegen_flags: <defaults>
</compile_context>

<pallas_src>
import jax
import jax.numpy as jnp
from jax.experimental import pallas as pl
from jax.experimental.pallas import tpu as pltpu

MAX_WH = 640.0      # self.max_wh default
OUT_ROWS = 6        # packed output rows: x1, y1, x2, y2, max_score, class_id


def _cdiv(a, b):
    return -(-a // b)


def _round_up(a, m):
    return _cdiv(a, m) * m


def _choose_tiles(N, B, max_tile):
    """Pick TILE_N to (a) keep blocks big (amortize per-grid-step overhead),
    (b) minimize padded anchor columns, (c) keep >= 2 grid steps when B == 1 so
    both v7x TensorCores get work."""
    steps = max(_cdiv(_round_up(N, 128), max_tile), 2 if B == 1 else 1)
    tile = _round_up(_cdiv(N, steps), 128)
    steps = _cdiv(N, tile)
    return tile, tile * steps


def _make_kernel(C, C_pad, TILE_N, LCHUNK):
    """Kernel over one (F_pad, TILE_N) block: features on sublanes, anchors on lanes.
    Rows [0, C_pad) are class scores (classes-first layout), rows [C_pad, C_pad+5)
    are cx, cy, w, h, conf."""
    G = C_pad // 8

    def kernel(xt_ref, out_ref):
        # Lane-chunked streaming pass: per chunk, only O(10) (8, LCHUNK) values are
        # live, so there is no VMEM spill regardless of TILE_N.
        for start in range(0, TILE_N, LCHUNK):
            width = min(LCHUNK, TILE_N - start)
            cols = pl.ds(start, width)

            # box + conf rows only (the 3 layout pad rows are never loaded)
            bc = xt_ref[pl.ds(C_pad, 5), cols].astype(jnp.float32)     # (5, width)
            conf = bc[4:5, :]                                          # (1, width)

            if C == 1:
                # n_classes == 1 branch of the PyTorch module: scores = conf
                best = conf
                cat = jnp.zeros_like(conf)
            else:
                # fused streaming max/argmax over class-row groups of 8 sublanes
                run_max = jnp.full((8, width), -jnp.inf, jnp.float32)
                run_grp = jnp.zeros((8, width), jnp.float32)
                for g in range(G):                        # static, unrolled
                    rows = xt_ref[pl.ds(8 * g, 8), cols].astype(jnp.float32) * conf
                    if g == G - 1 and C % 8 != 0:         # mask layout-padded class rows
                        rid = jax.lax.broadcasted_iota(jnp.int32, (8, width), 0)
                        rows = jnp.where(rid < C - 8 * g, rows, -jnp.inf)
                    better = rows > run_max               # strict '>' keeps first occurrence
                    run_grp = jnp.where(better, jnp.float32(g), run_grp)
                    run_max = jnp.maximum(run_max, rows)
                # collapse the 8 per-row partial results (cheap sublane reduce)
                best = jnp.max(run_max, axis=0, keepdims=True)                 # (1, width)
                row_id = jax.lax.broadcasted_iota(jnp.int32, (8, width), 0)
                abs_id = run_grp * 8.0 + row_id.astype(jnp.float32)
                cat = jnp.min(jnp.where(run_max == best, abs_id, jnp.float32(C_pad)),
                              axis=0, keepdims=True)      # first-occurrence argmax
                # NOTE: argmax via float-encoded index is exact for C < 2^24; NaN scores
                # would fall through to class id == C_pad (documented precondition).

            # cxcywh -> xyxy (the 4x4 convert matrix is a constant: pure VPU math)
            cx, cy = bc[0:1, :], bc[1:2, :]
            hw, hh = 0.5 * bc[2:3, :], 0.5 * bc[3:4, :]

            # direct per-row stores — no concatenate, no full-slab temporary
            out_ref[pl.ds(0, 1), cols] = cx - hw
            out_ref[pl.ds(1, 1), cols] = cy - hh
            out_ref[pl.ds(2, 1), cols] = cx + hw
            out_ref[pl.ds(3, 1), cols] = cy + hh
            out_ref[pl.ds(4, 1), cols] = best
            out_ref[pl.ds(5, 1), cols] = cat

    return kernel


def _onnx_ort_packed(x, *, tile_n=None, max_tile=4096, lane_chunk=512):
    """Runs the Pallas kernel. Returns the packed slab (B, 6, N) float32:
    rows = x1, y1, x2, y2, max_score, class_id."""
    B, N, F = x.shape
    assert F >= 6, "expected x of shape (B, N, 5 + n_classes)"
    C = F - 5                              # n_classes inferred from the last dim
    C_pad = max(_round_up(C, 8), 8)
    F_pad = C_pad + 8                      # classes | cx cy w h conf | 3 pad rows

    if tile_n is None:
        TILE_N, N_pad = _choose_tiles(N, B, max_tile)
    else:
        TILE_N = _round_up(min(tile_n, _round_up(N, 128)), 128)
        N_pad = _round_up(N, TILE_N)
    LCHUNK = min(_round_up(lane_chunk, 128), TILE_N)

    # ---- single-pass host layout prep (classes first -> everything sublane aligned),
    # ---- staying in the input dtype (bf16 passthrough halves HBM read bytes on v5e/v6e)
    parts = [x[..., 5:]]                                       # class block (B, N, C)
    if C_pad > C:
        parts.append(jnp.zeros((B, N, C_pad - C), x.dtype))    # masked to -inf in-kernel
    parts.append(x[..., :5])                                   # cx, cy, w, h, conf
    parts.append(jnp.zeros((B, N, 3), x.dtype))
    xr = jnp.concatenate(parts, axis=-1)                       # (B, N, F_pad)
    xt = jnp.transpose(xr, (0, 2, 1))                          # (B, F_pad, N)
    if N_pad > N:
        xt = jnp.pad(xt, ((0, 0), (0, 0), (0, N_pad - N)))

    grid = (B, N_pad // TILE_N)
    bytes_in = B * F_pad * N_pad * x.dtype.itemsize
    bytes_out = B * OUT_ROWS * N_pad * 4

    packed = pl.pallas_call(
        _make_kernel(C, C_pad, TILE_N, LCHUNK),
        out_shape=jax.ShapeDtypeStruct((B, OUT_ROWS, N_pad), jnp.float32),
        grid=grid,
        in_specs=[pl.BlockSpec((None, F_pad, TILE_N), lambda b, t: (b, 0, t))],
        out_specs=pl.BlockSpec((None, OUT_ROWS, TILE_N), lambda b, t: (b, 0, t)),
        compiler_params=pltpu.CompilerParams(
            dimension_semantics=("parallel", "parallel")),
        cost_estimate=pl.CostEstimate(
            flops=int(B * N * (4 * C + 30)),
            transcendentals=0,
            bytes_accessed=int(bytes_in + bytes_out)),
    )(xt)

    return packed[:, :, :N]


def onnx_ort_core(x, *, tile_n=None, with_nmsbox=False):
    """Kernel-computed part in module layout: boxes (B,N,4), max_score (B,N,1),
    category_id (B,N,1).  Optionally nmsbox (= boxes + class_id * max_wh), which the
    PyTorch module only feeds to the random ORT_NMS placeholder."""
    packed = _onnx_ort_packed(x, tile_n=tile_n)
    boxes = jnp.transpose(packed[:, 0:4, :], (0, 2, 1))
    max_score = jnp.transpose(packed[:, 4:5, :], (0, 2, 1))
    category_id = jnp.transpose(packed[:, 5:6, :], (0, 2, 1)).astype(jnp.int32)
    if with_nmsbox:
        nmsbox = boxes + category_id.astype(jnp.float32) * MAX_WH
        return boxes, max_score, category_id, nmsbox
    return boxes, max_score, category_id


def onnx_ort_forward(x, num_det=16, seed=0):
    """Full ONNX_ORT.forward equivalent.  Output shape: (num_det, 7) =
    [batch_idx, x1, y1, x2, y2, class_id, score]."""
    packed = _onnx_ort_packed(x)           # (B, 6, N)
    B, _, N = packed.shape

    # TODO(synk): ORT_NMS is a *random* symbolic placeholder in PyTorch (real NMS only
    # exists after ONNX export); reproduced here as a deterministic selection with the
    # same (batch, 0, idx) structure.
    key = jax.random.PRNGKey(seed)
    X = jnp.sort(jax.random.randint(key, (num_det,), 0, B))            # batch index
    Y = jnp.minimum(jnp.arange(100, 100 + num_det, dtype=jnp.int32), N - 1)

    sel = packed[X, :, Y]                                              # (num_det, 6)
    Xf = X[:, None].astype(jnp.float32)
    return jnp.concatenate(
        [Xf, sel[:, 0:4], sel[:, 5:6], sel[:, 4:5]], axis=1)           # (num_det, 7)


def _reference_core(x):
    """Pure-JAX reference (elementwise, mathematically identical to boxes @ convert_matrix)."""
    xf = x.astype(jnp.float32)
    cx, cy, w, h = xf[..., 0:1], xf[..., 1:2], xf[..., 2:3], xf[..., 3:4]
    boxes = jnp.concatenate(
        [cx - 0.5 * w, cy - 0.5 * h, cx + 0.5 * w, cy + 0.5 * h], axis=-1)
    C = xf.shape[-1] - 5
    scores = xf[..., 4:5] if C == 1 else xf[..., 5:] * xf[..., 4:5]
    max_score = scores.max(-1, keepdims=True)
    cat = scores.argmax(-1, keepdims=True).astype(jnp.int32)
    return boxes, max_score, cat


def _check(name, got, ref, atol=1e-4, rtol=1e-4):
    for a, b in zip(got, ref):
        assert jnp.allclose(a.astype(jnp.float32), b.astype(jnp.float32),
                            atol=atol, rtol=rtol), f"{name}: mismatch vs reference"


if __name__ == "__main__":
    # --- test 1: module-default shapes, small ---------------------------------
    B, N, C = 2, 128, 80                     # x: (2, 128, 85)
    key = jax.random.PRNGKey(0)
    x = jax.random.uniform(key, (B, N, 5 + C), dtype=jnp.float32)
    x = x.at[..., :4].mul(64.0)              # cxcywh in pixel-ish units

    out_k = onnx_ort_core(x)
    jax.block_until_ready(out_k)
    _check("f32/small", out_k, _reference_core(x))

    # --- test 2: B == 1 (two-step grid split), padded N, multi lane-chunk -----
    x2 = jax.random.uniform(jax.random.PRNGKey(1), (1, 2176, 85), dtype=jnp.float32)
    x2 = x2.at[..., :4].mul(64.0)
    out_k2 = onnx_ort_core(x2)
    jax.block_until_ready(out_k2)
    _check("f32/padded", out_k2, _reference_core(x2))

    # --- test 3: bf16 passthrough (input stays bf16 through the DMA) ----------
    x_bf = x.astype(jnp.bfloat16)
    out_bf = onnx_ort_core(x_bf)
    jax.block_until_ready(out_bf)
    _check("bf16", out_bf, _reference_core(x_bf.astype(jnp.float32)),
           atol=1e-3, rtol=1e-3)

    # --- full forward (kernel + deterministic NMS-placeholder selection) ------
    result = onnx_ort_forward(x, num_det=16, seed=0)
    jax.block_until_ready(result)
    assert result.shape == (16, 7)

    print("KERNEL_OK")
</pallas_src>

<mosaic_0001>
module attributes {stable_mosaic.version = 11 : i64} {
  func.func @kernel(%arg0: i32, %arg1: i32, %arg2: memref<1x88x128xf32, #tpu.memory_space<vmem>>, %arg3: memref<1x6x128xf32, #tpu.memory_space<vmem>>) attributes {dimension_semantics = [#tpu.dimension_semantics<parallel>, #tpu.dimension_semantics<parallel>], iteration_bounds = array<i64: 2, 1>, scalar_prefetch = 0 : i64, scratch_operands = 0 : i64, tpu.core_type = #tpu.core_type<tc>, window_params = [{transform_indices = @transform_0, window_bounds = array<i64: 1, 88, 128>}, {transform_indices = @transform_1, window_bounds = array<i64: 1, 6, 128>}]} {
    %c0 = arith.constant 0 : index
    %c80 = arith.constant 80 : index
    %c0_0 = arith.constant 0 : index
    %0 = vector.load %arg2[%c0, %c80, %c0_0] : memref<1x88x128xf32, #tpu.memory_space<vmem>>, vector<1x5x128xf32>
    %1 = vector.shape_cast %0 : vector<1x5x128xf32> to vector<5x128xf32>
    %2 = vector.extract_strided_slice %1 {offsets = [4, 0], sizes = [1, 128], strides = [1, 1]} : vector<5x128xf32> to vector<1x128xf32>
    %cst = arith.constant 0xFF800000 : f32
    %3 = vector.broadcast %cst : f32 to vector<8x128xf32>
    %cst_1 = arith.constant 0.000000e+00 : f32
    %4 = vector.broadcast %cst_1 : f32 to vector<8x128xf32>
    %c0_2 = arith.constant 0 : index
    %c0_3 = arith.constant 0 : index
    %c0_4 = arith.constant 0 : index
    %5 = vector.load %arg2[%c0_2, %c0_3, %c0_4] : memref<1x88x128xf32, #tpu.memory_space<vmem>>, vector<1x8x128xf32>
    %6 = vector.shape_cast %5 : vector<1x8x128xf32> to vector<8x128xf32>
    %7 = vector.broadcast %2 : vector<1x128xf32> to vector<8x128xf32>
    %8 = arith.mulf %6, %7 : vector<8x128xf32>
    %9 = arith.cmpf ogt, %8, %3 : vector<8x128xf32>
    %cst_5 = arith.constant 0.000000e+00 : f32
    %10 = vector.broadcast %cst_5 : f32 to vector<8x128xf32>
    %11 = arith.select %9, %10, %4 : vector<8x128xi1>, vector<8x128xf32>
    %12 = arith.maximumf %3, %8 : vector<8x128xf32>
    %c0_6 = arith.constant 0 : index
    %c8 = arith.constant 8 : index
    %c0_7 = arith.constant 0 : index
    %13 = vector.load %arg2[%c0_6, %c8, %c0_7] : memref<1x88x128xf32, #tpu.memory_space<vmem>>, vector<1x8x128xf32>
    %14 = vector.shape_cast %13 : vector<1x8x128xf32> to vector<8x128xf32>
    %15 = vector.broadcast %2 : vector<1x128xf32> to vector<8x128xf32>
    %16 = arith.mulf %14, %15 : vector<8x128xf32>
    %17 = arith.cmpf ogt, %16, %12 : vector<8x128xf32>
    %cst_8 = arith.constant 1.000000e+00 : f32
    %18 = vector.broadcast %cst_8 : f32 to vector<8x128xf32>
    %19 = arith.select %17, %18, %11 : vector<8x128xi1>, vector<8x128xf32>
    %20 = arith.maximumf %12, %16 : vector<8x128xf32>
    %c0_9 = arith.constant 0 : index
    %c16 = arith.constant 16 : index
    %c0_10 = arith.constant 0 : index
    %21 = vector.load %arg2[%c0_9, %c16, %c0_10] : memref<1x88x128xf32, #tpu.memory_space<vmem>>, vector<1x8x128xf32>
    %22 = vector.shape_cast %21 : vector<1x8x128xf32> to vector<8x128xf32>
    %23 = vector.broadcast %2 : vector<1x128xf32> to vector<8x128xf32>
    %24 = arith.mulf %22, %23 : vector<8x128xf32>
    %25 = arith.cmpf ogt, %24, %20 : vector<8x128xf32>
    %cst_11 = arith.constant 2.000000e+00 : f32
    %26 = vector.broadcast %cst_11 : f32 to vector<8x128xf32>
    %27 = arith.select %25, %26, %19 : vector<8x128xi1>, vector<8x128xf32>
    %28 = arith.maximumf %20, %24 : vector<8x128xf32>
    %c0_12 = arith.constant 0 : index
    %c24 = arith.constant 24 : index
    %c0_13 = arith.constant 0 : index
    %29 = vector.load %arg2[%c0_12, %c24, %c0_13] : memref<1x88x128xf32, #tpu.memory_space<vmem>>, vector<1x8x128xf32>
    %30 = vector.shape_cast %29 : vector<1x8x128xf32> to vector<8x128xf32>
    %31 = vector.broadcast %2 : vector<1x128xf32> to vector<8x128xf32>
    %32 = arith.mulf %30, %31 : vector<8x128xf32>
    %33 = arith.cmpf ogt, %32, %28 : vector<8x128xf32>
    %cst_14 = arith.constant 3.000000e+00 : f32
    %34 = vector.broadcast %cst_14 : f32 to vector<8x128xf32>
    %35 = arith.select %33, %34, %27 : vector<8x128xi1>, vector<8x128xf32>
    %36 = arith.maximumf %28, %32 : vector<8x128xf32>
    %c0_15 = arith.constant 0 : index
    %c32 = arith.constant 32 : index
    %c0_16 = arith.constant 0 : index
    %37 = vector.load %arg2[%c0_15, %c32, %c0_16] : memref<1x88x128xf32, #tpu.memory_space<vmem>>, vector<1x8x128xf32>
    %38 = vector.shape_cast %37 : vector<1x8x128xf32> to vector<8x128xf32>
    %39 = vector.broadcast %2 : vector<1x128xf32> to vector<8x128xf32>
    %40 = arith.mulf %38, %39 : vector<8x128xf32>
    %41 = arith.cmpf ogt, %40, %36 : vector<8x128xf32>
    %cst_17 = arith.constant 4.000000e+00 : f32
    %42 = vector.broadcast %cst_17 : f32 to vector<8x128xf32>
    %43 = arith.select %41, %42, %35 : vector<8x128xi1>, vector<8x128xf32>
    %44 = arith.maximumf %36, %40 : vector<8x128xf32>
    %c0_18 = arith.constant 0 : index
    %c40 = arith.constant 40 : index
    %c0_19 = arith.constant 0 : index
    %45 = vector.load %arg2[%c0_18, %c40, %c0_19] : memref<1x88x128xf32, #tpu.memory_space<vmem>>, vector<1x8x128xf32>
    %46 = vector.shape_cast %45 : vector<1x8x128xf32> to vector<8x128xf32>
    %47 = vector.broadcast %2 : vector<1x128xf32> to vector<8x128xf32>
    %48 = arith.mulf %46, %47 : vector<8x128xf32>
    %49 = arith.cmpf ogt, %48, %44 : vector<8x128xf32>
    %cst_20 = arith.constant 5.000000e+00 : f32
    %50 = vector.broadcast %cst_20 : f32 to vector<8x128xf32>
    %51 = arith.select %49, %50, %43 : vector<8x128xi1>, vector<8x128xf32>
    %52 = arith.maximumf %44, %48 : vector<8x128xf32>
    %c0_21 = arith.constant 0 : index
    %c48 = arith.constant 48 : index
    %c0_22 = arith.constant 0 : index
    %53 = vector.load %arg2[%c0_21, %c48, %c0_22] : memref<1x88x128xf32, #tpu.memory_space<vmem>>, vector<1x8x128xf32>
    %54 = vector.shape_cast %53 : vector<1x8x128xf32> to vector<8x128xf32>
    %55 = vector.broadcast %2 : vector<1x128xf32> to vector<8x128xf32>
    %56 = arith.mulf %54, %55 : vector<8x128xf32>
    %57 = arith.cmpf ogt, %56, %52 : vector<8x128xf32>
    %cst_23 = arith.constant 6.000000e+00 : f32
    %58 = vector.broadcast %cst_23 : f32 to vector<8x128xf32>
    %59 = arith.select %57, %58, %51 : vector<8x128xi1>, vector<8x128xf32>
    %60 = arith.maximumf %52, %56 : vector<8x128xf32>
    %c0_24 = arith.constant 0 : index
    %c56 = arith.constant 56 : index
    %c0_25 = arith.constant 0 : index
    %61 = vector.load %arg2[%c0_24, %c56, %c0_25] : memref<1x88x128xf32, #tpu.memory_space<vmem>>, vector<1x8x128xf32>
    %62 = vector.shape_cast %61 : vector<1x8x128xf32> to vector<8x128xf32>
    %63 = vector.broadcast %2 : vector<1x128xf32> to vector<8x128xf32>
    %64 = arith.mulf %62, %63 : vector<8x128xf32>
    %65 = arith.cmpf ogt, %64, %60 : vector<8x128xf32>
    %cst_26 = arith.constant 7.000000e+00 : f32
    %66 = vector.broadcast %cst_26 : f32 to vector<8x128xf32>
    %67 = arith.select %65, %66, %59 : vector<8x128xi1>, vector<8x128xf32>
    %68 = arith.maximumf %60, %64 : vector<8x128xf32>
    %c0_27 = arith.constant 0 : index
    %c64 = arith.constant 64 : index
    %c0_28 = arith.constant 0 : index
    %69 = vector.load %arg2[%c0_27, %c64, %c0_28] : memref<1x88x128xf32, #tpu.memory_space<vmem>>, vector<1x8x128xf32>
    %70 = vector.shape_cast %69 : vector<1x8x128xf32> to vector<8x128xf32>
    %71 = vector.broadcast %2 : vector<1x128xf32> to vector<8x128xf32>
    %72 = arith.mulf %70, %71 : vector<8x128xf32>
    %73 = arith.cmpf ogt, %72, %68 : vector<8x128xf32>
    %cst_29 = arith.constant 8.000000e+00 : f32
    %74 = vector.broadcast %cst_29 : f32 to vector<8x128xf32>
    %75 = arith.select %73, %74, %67 : vector<8x128xi1>, vector<8x128xf32>
    %76 = arith.maximumf %68, %72 : vector<8x128xf32>
    %c0_30 = arith.constant 0 : index
    %c72 = arith.constant 72 : index
    %c0_31 = arith.constant 0 : index
    %77 = vector.load %arg2[%c0_30, %c72, %c0_31] : memref<1x88x128xf32, #tpu.memory_space<vmem>>, vector<1x8x128xf32>
    %78 = vector.shape_cast %77 : vector<1x8x128xf32> to vector<8x128xf32>
    %79 = vector.broadcast %2 : vector<1x128xf32> to vector<8x128xf32>
    %80 = arith.mulf %78, %79 : vector<8x128xf32>
    %81 = arith.cmpf ogt, %80, %76 : vector<8x128xf32>
    %cst_32 = arith.constant 9.000000e+00 : f32
    %82 = vector.broadcast %cst_32 : f32 to vector<8x128xf32>
    %83 = arith.select %81, %82, %75 : vector<8x128xi1>, vector<8x128xf32>
    %84 = arith.maximumf %76, %80 : vector<8x128xf32>
    %cst_33 = arith.constant dense<0xFF800000> : vector<128xf32>
    %85 = vector.multi_reduction <maximumf>, %84, %cst_33 [0] : vector<8x128xf32> to vector<128xf32>
    %86 = vector.shape_cast %85 : vector<128xf32> to vector<1x128xf32>
    %87 = tpu.iota {dimensions = array<i32: 0>} : vector<8x128xi32>
    %cst_34 = arith.constant 8.000000e+00 : f32
    %88 = vector.broadcast %cst_34 : f32 to vector<8x128xf32>
    %89 = arith.mulf %83, %88 : vector<8x128xf32>
    %90 = arith.sitofp %87 : vector<8x128xi32> to vector<8x128xf32>
    %91 = arith.addf %89, %90 : vector<8x128xf32>
    %92 = vector.broadcast %86 : vector<1x128xf32> to vector<8x128xf32>
    %93 = arith.cmpf oeq, %84, %92 : vector<8x128xf32>
    %cst_35 = arith.constant 8.000000e+01 : f32
    %94 = vector.broadcast %cst_35 : f32 to vector<8x128xf32>
    %95 = arith.select %93, %91, %94 : vector<8x128xi1>, vector<8x128xf32>
    %cst_36 = arith.constant dense<0x7F800000> : vector<128xf32>
    %96 = vector.multi_reduction <minimumf>, %95, %cst_36 [0] : vector<8x128xf32> to vector<128xf32>
    %97 = vector.shape_cast %96 : vector<128xf32> to vector<1x128xf32>
    %98 = vector.extract_strided_slice %1 {offsets = [0, 0], sizes = [1, 128], strides = [1, 1]} : vector<5x128xf32> to vector<1x128xf32>
    %99 = vector.extract_strided_slice %1 {offsets = [1, 0], sizes = [1, 128], strides = [1, 1]} : vector<5x128xf32> to vector<1x128xf32>
    %100 = vector.extract_strided_slice %1 {offsets = [2, 0], sizes = [1, 128], strides = [1, 1]} : vector<5x128xf32> to vector<1x128xf32>
    %cst_37 = arith.constant 5.000000e-01 : f32
    %101 = vector.broadcast %cst_37 : f32 to vector<1x128xf32>
    %102 = arith.mulf %101, %100 : vector<1x128xf32>
    %103 = vector.extract_strided_slice %1 {offsets = [3, 0], sizes = [1, 128], strides = [1, 1]} : vector<5x128xf32> to vector<1x128xf32>
    %cst_38 = arith.constant 5.000000e-01 : f32
    %104 = vector.broadcast %cst_38 : f32 to vector<1x128xf32>
    %105 = arith.mulf %104, %103 : vector<1x128xf32>
    %106 = arith.subf %98, %102 : vector<1x128xf32>
    %c0_39 = arith.constant 0 : index
    %c0_40 = arith.constant 0 : index
    %c0_41 = arith.constant 0 : index
    %107 = vector.load %arg3[%c0_39, %c0_40, %c0_41] : memref<1x6x128xf32, #tpu.memory_space<vmem>>, vector<1x1x128xf32>
    %108 = vector.shape_cast %107 : vector<1x1x128xf32> to vector<1x128xf32>
    %109 = vector.shape_cast %106 : vector<1x128xf32> to vector<1x1x128xf32>
    tpu.vector_store %arg3[%c0_39, %c0_40, %c0_41], %109 {strides = array<i32>} : memref<1x6x128xf32, #tpu.memory_space<vmem>>, vector<1x1x128xf32>,
    %110 = arith.subf %99, %105 : vector<1x128xf32>
    %c0_42 = arith.constant 0 : index
    %c1 = arith.constant 1 : index
    %c0_43 = arith.constant 0 : index
    %111 = vector.load %arg3[%c0_42, %c1, %c0_43] : memref<1x6x128xf32, #tpu.memory_space<vmem>>, vector<1x1x128xf32>
    %112 = vector.shape_cast %111 : vector<1x1x128xf32> to vector<1x128xf32>
    %113 = vector.shape_cast %110 : vector<1x128xf32> to vector<1x1x128xf32>
    tpu.vector_store %arg3[%c0_42, %c1, %c0_43], %113 {strides = array<i32>} : memref<1x6x128xf32, #tpu.memory_space<vmem>>, vector<1x1x128xf32>,
    %114 = arith.addf %98, %102 : vector<1x128xf32>
    %c0_44 = arith.constant 0 : index
    %c2 = arith.constant 2 : index
    %c0_45 = arith.constant 0 : index
    %115 = vector.load %arg3[%c0_44, %c2, %c0_45] : memref<1x6x128xf32, #tpu.memory_space<vmem>>, vector<1x1x128xf32>
    %116 = vector.shape_cast %115 : vector<1x1x128xf32> to vector<1x128xf32>
    %117 = vector.shape_cast %114 : vector<1x128xf32> to vector<1x1x128xf32>
    tpu.vector_store %arg3[%c0_44, %c2, %c0_45], %117 {strides = array<i32>} : memref<1x6x128xf32, #tpu.memory_space<vmem>>, vector<1x1x128xf32>,
    %118 = arith.addf %99, %105 : vector<1x128xf32>
    %c0_46 = arith.constant 0 : index
    %c3 = arith.constant 3 : index
    %c0_47 = arith.constant 0 : index
    %119 = vector.load %arg3[%c0_46, %c3, %c0_47] : memref<1x6x128xf32, #tpu.memory_space<vmem>>, vector<1x1x128xf32>
    %120 = vector.shape_cast %119 : vector<1x1x128xf32> to vector<1x128xf32>
    %121 = vector.shape_cast %118 : vector<1x128xf32> to vector<1x1x128xf32>
    tpu.vector_store %arg3[%c0_46, %c3, %c0_47], %121 {strides = array<i32>} : memref<1x6x128xf32, #tpu.memory_space<vmem>>, vector<1x1x128xf32>,
    %c0_48 = arith.constant 0 : index
    %c4 = arith.constant 4 : index
    %c0_49 = arith.constant 0 : index
    %122 = vector.load %arg3[%c0_48, %c4, %c0_49] : memref<1x6x128xf32, #tpu.memory_space<vmem>>, vector<1x1x128xf32>
    %123 = vector.shape_cast %122 : vector<1x1x128xf32> to vector<1x128xf32>
    %124 = vector.shape_cast %86 : vector<1x128xf32> to vector<1x1x128xf32>
    tpu.vector_store %arg3[%c0_48, %c4, %c0_49], %124 {strides = array<i32>} : memref<1x6x128xf32, #tpu.memory_space<vmem>>, vector<1x1x128xf32>,
    %c0_50 = arith.constant 0 : index
    %c5 = arith.constant 5 : index
    %c0_51 = arith.constant 0 : index
    %125 = vector.load %arg3[%c0_50, %c5, %c0_51] : memref<1x6x128xf32, #tpu.memory_space<vmem>>, vector<1x1x128xf32>
    %126 = vector.shape_cast %125 : vector<1x1x128xf32> to vector<1x128xf32>
    %127 = vector.shape_cast %97 : vector<1x128xf32> to vector<1x1x128xf32>
    tpu.vector_store %arg3[%c0_50, %c5, %c0_51], %127 {strides = array<i32>} : memref<1x6x128xf32, #tpu.memory_space<vmem>>, vector<1x1x128xf32>,
    return
  }
  func.func @transform_0(%arg0: i32, %arg1: i32) -> (i32, i32, i32) {
    %c0_i32 = arith.constant 0 : i32
    %c0_i32_0 = arith.constant 0 : i32
    return %arg0, %c0_i32, %arg1 : i32, i32, i32
  }
  func.func @transform_1(%arg0: i32, %arg1: i32) -> (i32, i32, i32) {
    %c0_i32 = arith.constant 0 : i32
    %c0_i32_0 = arith.constant 0 : i32
    return %arg0, %c0_i32, %arg1 : i32, i32, i32
  }
}

</mosaic_0001>

<bundles_post_ra>
// kernel: tpu_custom_call.1
= control target key start
LH: loop header
LB: loop body
LE: loop exit
PB: predicated region body
PF: predicated region fallthrough
CT: control target
= control target key end

     0   :  { %6 = vsyncpa [#allocation3], 0  ;;  %s603_s0 = inlined_call_operand.hbm [shape: f32[2,88,128], index: 0, kind: input, shape index: {}]   ;;  %s604_s1 = inlined_call_operand.vmem [shape: f32[2,6,128], index: 1, kind: output, shape index: {}]  }
   0x1   :  { %8 = vsyncpa [#allocation3 + $0x1], 0  ;;  %s490_s6 = smov 0   ;;  %s492_s7 = smov 0  }
   0x2   :  { %s494_s8 = smov 0   ;;  %s496_s9 = smov 0  }
   0x3   :  { %s498_s10 = smov 0   ;;  %s500_s11 = smov 0  }
   0x4 LB: > { %s326_s12 = sadd.s32 4294967295, %s474_s11   ;;  %s26_s13 = sadd.s32 1, %s470_s10  ;;  %s474_s11 = sphi %s500_s11, %s14_s11   ;;  %s470_s10 = sphi %s498_s10, %s611_s10   ;;  %s466_s9 = sphi %s496_s9, %s610_s9   ;;  %s462_s8 = sphi %s494_s8, %s609_s8   ;;  %s458_s7 = sphi %s492_s7, %s608_s7   ;;  %s454_s6 = sphi %s490_s6, %s607_s6  }
   0x5   : > { %p28_p0 = scmp.ge.s32.totalorder %s26_s13, 2  ;;  %s35_s14 = sadd.s32 1, %s462_s8 }
   0x6   : > { %p42_p1 = scmp.ne.s32.totalorder %s462_s8, %s458_s7  ;;  %p43_p2 = scmp.eq.s32.totalorder %s474_s11, 0 }
   0x7   : > { %s613_s13 = smov (%p28_p0, %s26_s13), 0  ;;  %p48_p4 = scmp.ne.s32.totalorder %s458_s7, %s454_s6 }
   0x8   : > { %p44_p3 = por %p43_p2, %p42_p1  ;;  %s30_s15 = ssub.s32 %s470_s10, %s613_s13 }
   0x9   : > { %p49_p5 = scmp.eq.s32.totalorder %s326_s12, 0  ;;  %p33_p6 = scmp.eq.s32.totalorder %s30_s15, 0 }
   0xa   : > { %p344_p8 = scmp.lt.s32.totalorder %s474_s11, 2  ;;  %s100_s18 = sand.u32 1, %s462_s8  }
   0xb   : > { %p529_p7 = por %p49_p5, %p48_p4  ;;  %s336_s19 = smul.u32 1408, %s470_s10 }
   0xc   : > { %s535_s17 = scalar_select %p33_p6, %s462_s8, %s35_s14  }
   0xd   : > { %s335_s20 = smul.u32 88, %s100_s18  ;;  %s111_s23 = scalar_lea.hbm %s603_s0, %s336_s19 }
   0xe   : > { %p542_p9 = pnand %p344_p8, %p44_p3  ;;  %s101_s27 = scalar_lea.sflag [#allocation3], %s100_s18 }
   0xf   : > { %s104_s25 = scalar_lea.vmem [#allocation2], %s335_s20  ;;  %s476_s29 = smov [#allocation2]  }
  0x10   : > { %s112_s26 = sshll.u32 %s104_s25, 4  ;;  %p398_p10 = pneg %p542_p9  ;;  %s113_s26 = int_to_ptr.vmem [resolvable:$true] %s112_s26 }
  0x11   : > { %s409_s28 = scalar_lea.vmem %s113_s26, 1408  ;;  %s414_s30 = sshll.u32 %s476_s29, 4  ;;  %s415_s30 = int_to_ptr.vmem [resolvable:$false] %s414_s30 }
  0x12   : > { %p410_p11 = scmp.ne.s32.totalorder %s113_s26, %s409_s28  ;;  %s416_s2 = scalar_lea.vmem %s415_s30, 2816 }
  0x13   : > { %p417_p0 = scmp.lt.s32.totalorder %s113_s26, %s415_s30  ;;  %p418_p1 = scmp.lt.s32.totalorder %s416_s2, %s409_s28 }
  0x14   : > { %p412_p12 = pnand %p410_p11, %p398_p10 }
  0x15   : > { %p419_p2 = por %p418_p1, %p417_p0 }
  0x16   : > { %p413_p13 = pneg %p412_p12 }
  0x18   : > { %p420_p3 = pnand %p419_p2, %p413_p13 }
  0x1a   : > { %423 = shalt.err (!%p420_p3)
}
  0x1b   : > { %s477_s3 = smov 128   ;;  %s478_s4 = smov 8  }
  0x1c   : > { %343 = dma.hbm_to_vmem [thread:$0]  (!%p542_p9), %s111_s23, 1408, %s113_s26, %s101_s27, %s477_s3, %s477_s3, %s478_s4  }
  0x1d   : > { %p331_p4 = scmp.ge.s32.totalorder %s474_s11, 1  ;;  %p120_p5 = scmp.lt.s32.totalorder %s474_s11, 3 }
  0x1f   : > { %p121_p6 = pnand %p331_p4, %p120_p5 }
  0x20   : > { %s126_s5 = sand.u32 (!%p121_p6), 1, %s458_s7  }
  0x21   : > { %124 = sbr.rel (%p121_p6) target bundleno = 94 (0x5e), region = 24  ;;  %s127_s12 = scalar_lea.sflag (!%p121_p6), [#allocation3], %s126_s5 }
  0x22   : > { %s337_s6 = smul.u32 (!%p121_p6), 88, %s126_s5 }
  0x24   : > { %s553_s14 = scalar_lea.vmem (!%p121_p6), [#allocation2], %s337_s6 }
  0x26   : > { %449 = dma.done.wait (%p529_p7), %s127_s12, 1408  }
  0x27   : > { %451 = vsyncadd (%p529_p7), %s127_s12, 4294965888  ;;  %p151_p8 = scmp.lt.s32.totalorder %s466_s9, 1  ;;  %v160_v0 = vlaneseq  ;;  %v158_v3 = vld [vmem:[%s553_s14 + $0x50] sm:$0x1f]  ;;  %v159_v4 = vld [vmem:[%s553_s14] sm:$0xff]  ;;  %v479_v19 = vmov 0.0  }
  0x28   : > { %v165_v5 = vld [vmem:[%s553_s14 + $0x8] sm:$0xff]  ;;  %v229_v7 = vmul.f32 0.5, %v158_v3  ;;  %v170_v8 = vld [vmem:[%s553_s14 + $0x10] sm:$0xff]  ;;  %v175_v9 = vld [vmem:[%s553_s14 + $0x18] sm:$0xff] }
  0x29   : > { %v560_v1 = vshrl.u32 %v160_v0, 7  ;;  %s615_s9 = smov (!%p151_p8, %s466_s9), 1  ;;  %v180_v15 = vld [vmem:[%s553_s14 + $0x20] sm:$0xff]  ;;  %v185_v21 = vld [vmem:[%s553_s14 + $0x28] sm:$0xff]  ;;  %v190_v25 = vld [vmem:[%s553_s14 + $0x30] sm:$0xff] }
  0x2a   : > { %s332_s15 = sshll.u32 %s615_s9, 3  ;;  %v231_v10 = vrot.slane %v229_v7, 2  ;;  %v195_v29 = vld [vmem:[%s553_s14 + $0x38] sm:$0xff]  ;;  %v200_v33 = vld [vmem:[%s553_s14 + $0x40] sm:$0xff]  ;;  %v205_v37 = vld [vmem:[%s553_s14 + $0x48] sm:$0xff] }
  0x2b   : > { %v162_v2 = vsub.s32 4, %v560_v1  ;;  %s572_s19 = scalar_lea.vmem %s604_s1, %s332_s15  ;;  %v219_v52 = vcvt.s32.f32 %v560_v1 }
  0x2c   : > { %v233_v16 = vsub.f32 %v158_v3, %v231_v10  ;;  %v236_v17 = vadd.f32 %v231_v10, %v158_v3 }
  0x2d   : > { %v163_v6 = vrot.slane %v158_v3, %v162_v2 }
  0x2e   : > { %234 = vst [vmem:[%s572_s19] sm:$0x3] %v233_v16   ;;  %237 = vst [vmem:[%s572_s19 + $0x2] sm:$0x3] %v236_v17  }
  0x2f   : > { %v164_v11 = vmul.f32 %v163_v6, %v159_v4  ;;  %v166_v12 = vmul.f32 %v165_v5, %v163_v6  ;;  %v171_v13 = vmul.f32 %v170_v8, %v163_v6  ;;  %v176_v14 = vmul.f32 %v175_v9, %v163_v6 }
  0x30   : > { %v181_v23 = vmul.f32 %v180_v15, %v163_v6  ;;  %v186_v27 = vmul.f32 %v185_v21, %v163_v6  ;;  %v191_v31 = vmul.f32 %v190_v25, %v163_v6  ;;  %v196_v35 = vmul.f32 %v195_v29, %v163_v6 }
  0x31   : > { %vm167_vm0 = vcmp.gt.f32.partialorder %v166_v12, %v164_v11  ;;  %v169_v18 = vmax.f32 %v164_v11, %v166_v12  ;;  %v201_v39 = vmul.f32 %v200_v33, %v163_v6  ;;  %v206_v42 = vmul.f32 %v205_v37, %v163_v6 }
  0x32   : > { %v168_v20 = vsel %vm167_vm0, 1.0, %v479_v19 }
  0x33   : > { %vm172_vm1 = vcmp.gt.f32.partialorder %v171_v13, %v169_v18  ;;  %v174_v22 = vmax.f32 %v169_v18, %v171_v13 }
  0x34   : > { %v173_v24 = vsel %vm172_vm1, 2.0, %v168_v20 }
  0x35   : > { %vm177_vm2 = vcmp.gt.f32.partialorder %v176_v14, %v174_v22  ;;  %v179_v26 = vmax.f32 %v174_v22, %v176_v14 }
  0x36   : > { %v178_v28 = vsel %vm177_vm2, 3.0, %v173_v24 }
  0x37   : > { %vm182_vm3 = vcmp.gt.f32.partialorder %v181_v23, %v179_v26  ;;  %v184_v30 = vmax.f32 %v179_v26, %v181_v23 }
  0x38   : > { %v183_v32 = vsel %vm182_vm3, 4.0, %v178_v28 }
  0x39   : > { %vm187_vm4 = vcmp.gt.f32.partialorder %v186_v27, %v184_v30  ;;  %v189_v34 = vmax.f32 %v184_v30, %v186_v27 }
  0x3a   : > { %v188_v36 = vsel %vm187_vm4, 5.0, %v183_v32 }
  0x3b   : > { %vm192_vm5 = vcmp.gt.f32.partialorder %v191_v31, %v189_v34  ;;  %v194_v38 = vmax.f32 %v189_v34, %v191_v31 }
  0x3c   : > { %v193_v40 = vsel %vm192_vm5, 6.0, %v188_v36 }
  0x3d   : > { %vm197_vm6 = vcmp.gt.f32.partialorder %v196_v35, %v194_v38  ;;  %v199_v41 = vmax.f32 %v194_v38, %v196_v35 }
  0x3e   : > { %v198_v43 = vsel %vm197_vm6, 7.0, %v193_v40 }
  0x3f   : > { %vm202_vm7 = vcmp.gt.f32.partialorder %v201_v39, %v199_v41  ;;  %v204_v44 = vmax.f32 %v199_v41, %v201_v39 }
  0x40   : > { %v203_v46 = vsel %vm202_vm7, 8.0, %v198_v43 }
  0x41   : > { %v209_v45 = vmax.f32 %v204_v44, %v206_v42  ;;  %vm207_vm8 = vcmp.gt.f32.partialorder %v206_v42, %v204_v44 }
  0x42   : > { %v208_v48 = vsel %vm207_vm8, 9.0, %v203_v46 }
  0x43   : > { %v210_v47 = vrot.slane %v209_v45, 4  ;;  %v218_v51 = vmul.f32 8.0, %v208_v48 }
  0x45   : > { %v211_v49 = vmax.f32 %v209_v45, %v210_v47  ;;  %v220_v55 = vadd.f32 %v219_v52, %v218_v51 }
  0x47   : > { %v212_v50 = vrot.slane %v211_v49, 2 }
  0x49   : > { %v213_v53 = vmax.f32 %v211_v49, %v212_v50 }
  0x4b   : > { %v214_v54 = vrot.slane %v213_v53, 1 }
  0x4d   : > { %v215_v56 = vmax.f32 %v213_v53, %v214_v54 }
  0x4f   : > { %vm221_vm9 = vcmp.eq.f32.partialorder %v209_v45, %v215_v56  ;;  %239 = vst [vmem:[%s572_s19 + $0x4] sm:$0x1] %v215_v56 }
  0x50   : > { %v222_v57 = vsel %vm221_vm9, %v220_v55, 80.0 }
  0x51   : > { %v223_v58 = vrot.slane %v222_v57, 4 }
  0x53   : > { %v224_v59 = vmin.f32 %v222_v57, %v223_v58 }
  0x55   : > { %v225_v60 = vrot.slane %v224_v59, 2 }
  0x57   : > { %v226_v61 = vmin.f32 %v224_v59, %v225_v60 }
  0x59   : > { %v227_v62 = vrot.slane %v226_v61, 1 }
  0x5b   : > { %v228_v63 = vmin.f32 %v226_v61, %v227_v62 }
  0x5d   : > { %240 = vst [vmem:[%s572_s19 + $0x5] sm:$0x1] %v228_v63 }
  0x5e PF: > { %s14_s11 = sadd.s32 1, %s474_s11   ;;  %s607_s6 = smov %s458_s7 }
  0x5f   : > { %p11_p7 = scmp.ge.s32.totalorder %s14_s11, 4   ;;  %s608_s7 = smov %s462_s8 }
  0x60   : > { %s609_s8 = smov %s535_s17  ;;  %s610_s9 = smov %s470_s10 }
  0x61   : > { %s611_s10 = smov %s613_s13  ;;  %13 = sbr.rel (!%p11_p7) target bundleno = 4 (0x4), region = 64 }
  0x66   :  { %266 = vsyncpa [#allocation3], 1 }
  0x67   :  { %268 = vsyncpa [#allocation3 + $0x1], 1 }

</bundles_post_ra>
